<compile_context>
chip_gen: v5e
topology: v5e:2x2
jax: 0.10.0
libtpu: 0.0.40
codegen_flags: <defaults>
</compile_context>

<pallas_src>
import functools

import jax
import jax.numpy as jnp
from jax.experimental import pallas as pl
from jax.experimental.pallas import tpu as pltpu

LANE = 128
SUBLANE = 8


def _round_up(x, m):
    return (x + m - 1) // m * m


def _dice_partial_kernel(x_ref, t_ref, acc_ref, *, rows, tile_rows,
                         steps_per_split, full_blocks, need_mask, approx):
    """Accumulates per-split partial sums into acc_ref (block (1, 2, 8, 128)).

    acc_ref[0, 0] += partials of sum(sigmoid(x) * t)
    acc_ref[0, 1] += partials of sum(sigmoid(x) + t)
    """
    j = pl.program_id(0)   # split axis ("parallel": megacore split on v7x)
    i = pl.program_id(1)   # reduction step within the split ("arbitrary")

    @pl.when(i == 0)
    def _init():
        acc_ref[...] = jnp.zeros_like(acc_ref)

    x = x_ref[...].astype(jnp.float32)
    t = t_ref[...].astype(jnp.float32)
    # sigmoid(x) = 1 / (1 + exp(-x)); exp lands on the EUP slot.  With
    # approx=True the reciprocal also goes to the EUP (cheaper, ~1e-4 rel err).
    s = pl.reciprocal(1.0 + jnp.exp(-x), approx=approx)
    st = s * t
    spt = s + t

    r = tile_rows // SUBLANE

    def _accum(st_v, spt_v):
        # (tile_rows, 128) -> (8, 128) using vreg-wise VPU adds only; the one
        # cross-lane reduce happens once, over the tiny partials, in the
        # wrapper.
        acc_ref[0, 0, :, :] += jnp.sum(st_v.reshape(r, SUBLANE, LANE), axis=0)
        acc_ref[0, 1, :, :] += jnp.sum(spt_v.reshape(r, SUBLANE, LANE), axis=0)

    if need_mask:
        block_idx = j * steps_per_split + i
        is_ragged = block_idx >= full_blocks   # ragged last block / clamped

        @pl.when(jnp.logical_not(is_ragged))
        def _fast():                            # steady state: no mask cost
            _accum(st, spt)

        @pl.when(is_ragged)
        def _masked():
            # Remaining valid rows in this block; <= 0 for clamped blocks that
            # re-read the last block via the index_map clamp.  Masking happens
            # BEFORE accumulation so garbage in the undefined rows of the
            # ragged block can never poison the accumulator.
            rem_rows = rows - block_idx * tile_rows
            row = jax.lax.broadcasted_iota(jnp.int32, (tile_rows, LANE), 0)
            valid = row < rem_rows
            _accum(jnp.where(valid, st, 0.0), jnp.where(valid, spt, 0.0))
    else:
        _accum(st, spt)


def dice_loss(inputs, targets, smooth=1.0, tile_rows=4096, num_splits=None,
              approx_reciprocal=False):
    """Pallas TPU implementation of DiceLoss.forward. Returns a scalar f32."""
    x_flat = inputs.reshape(-1)
    t_flat = targets.reshape(-1)
    n = x_flat.shape[0]

    n_main = (n // LANE) * LANE
    rows = n_main // LANE
    smooth = jnp.float32(smooth)

    # <128-element tail handled with plain jnp (no full-array jnp.pad copy).
    if n_main != n:
        xt = x_flat[n_main:].astype(jnp.float32)
        tt = t_flat[n_main:].astype(jnp.float32)
        s_tail = jax.nn.sigmoid(xt)
        tail_inter = jnp.sum(s_tail * tt)
        tail_sumst = jnp.sum(s_tail) + jnp.sum(tt)
        x_main, t_main = x_flat[:n_main], t_flat[:n_main]
    else:
        tail_inter = jnp.float32(0.0)
        tail_sumst = jnp.float32(0.0)
        x_main, t_main = x_flat, t_flat

    if rows == 0:
        # Input smaller than one 128-lane row: nothing for the kernel to do.
        dice = (2.0 * tail_inter + smooth) / (tail_sumst + smooth)
        return 1.0 - dice

    x2 = x_main.reshape(rows, LANE)
    t2 = t_main.reshape(rows, LANE)

    # Dtype-aware tile floor: bf16 packs 2 rows/sublane, int8/fp8 pack 4.
    itemsize = max(1, jnp.dtype(inputs.dtype).itemsize)
    min_rows = SUBLANE * max(1, 4 // itemsize)
    tile_rows = max(min_rows, min(_round_up(tile_rows, min_rows),
                                  _round_up(rows, min_rows)))
    grid_rows = pl.cdiv(rows, tile_rows)

    if num_splits is None:
        # One split per TensorCore: v5e/v6e have 1 TC, v7x has 2.
        try:
            kind = jax.devices()[0].device_kind.lower()
        except Exception:  # pragma: no cover
            kind = ""
        num_splits = 2 if "v7" in kind else 1
    num_splits = max(1, min(num_splits, grid_rows))
    steps = pl.cdiv(grid_rows, num_splits)

    full_blocks = rows // tile_rows          # blocks whose rows are all valid
    need_mask = bool((rows % tile_rows) or (grid_rows % num_splits))

    if grid_rows % num_splits:
        max_block = grid_rows - 1

        def in_index(j, i):
            # Clamp block indices past the end (only when steps * num_splits >
            # grid_rows); their contribution is fully masked in-kernel.
            return (jnp.minimum(j * steps + i, max_block), 0)
    else:
        def in_index(j, i):
            return (j * steps + i, 0)

    kernel = functools.partial(
        _dice_partial_kernel, rows=rows, tile_rows=tile_rows,
        steps_per_split=steps, full_blocks=full_blocks, need_mask=need_mask,
        approx=approx_reciprocal)

    # TODO(synk): on v7x, confirm via xprof that the leading "parallel" axis
    # shards across both TensorCores; otherwise switch to CORE_PARALLEL.
    partials = pl.pallas_call(
        kernel,
        out_shape=jax.ShapeDtypeStruct((num_splits, 2, SUBLANE, LANE),
                                       jnp.float32),
        grid_spec=pltpu.PrefetchScalarGridSpec(
            num_scalar_prefetch=0,
            grid=(num_splits, steps),
            in_specs=[
                pl.BlockSpec((tile_rows, LANE), in_index),
                pl.BlockSpec((tile_rows, LANE), in_index),
            ],
            # Output block index depends only on the split axis, so the
            # (2, 8, 128) accumulator stays resident across the reduction axis.
            out_specs=pl.BlockSpec((1, 2, SUBLANE, LANE),
                                   lambda j, i: (j, 0, 0, 0)),
        ),
        compiler_params=pltpu.CompilerParams(
            dimension_semantics=("parallel", "arbitrary"),
        ),
        cost_estimate=pl.CostEstimate(
            flops=5 * n_main,
            transcendentals=n_main,
            bytes_accessed=2 * n_main * itemsize
            + num_splits * 2 * SUBLANE * LANE * 4),
    )(x2, t2)

    # Tiny final cross-lane reduction + scalar math in the wrapper.
    sums = jnp.sum(partials, axis=(0, 2, 3))   # (2,): inter, sum(s)+sum(t)
    inter = sums[0] + tail_inter
    sum_st = sums[1] + tail_sumst
    dice = (2.0 * inter + smooth) / (sum_st + smooth)
    return 1.0 - dice


def dice_loss_ref(inputs, targets, smooth=1.0):
    s = jax.nn.sigmoid(inputs.astype(jnp.float32)).reshape(-1)
    t = targets.astype(jnp.float32).reshape(-1)
    inter = jnp.sum(s * t)
    return 1.0 - (2.0 * inter + smooth) / (jnp.sum(s) + jnp.sum(t) + smooth)


if __name__ == "__main__":
    key = jax.random.PRNGKey(0)
    k1, k2, k3, k4 = jax.random.split(key, 4)

    # Case 1: NCHW like the PyTorch module, f32, N a multiple of 128.
    x1 = jax.random.normal(k1, (2, 4, 16, 16), dtype=jnp.float32)
    t1 = (jax.random.uniform(k2, (2, 4, 16, 16)) > 0.5).astype(jnp.float32)
    out1 = jax.block_until_ready(dice_loss(x1, t1, smooth=1.0))
    ref1 = jax.block_until_ready(dice_loss_ref(x1, t1, smooth=1.0))
    assert jnp.allclose(out1, ref1, atol=1e-4, rtol=1e-4), (out1, ref1)

    # Case 2: ragged N (not a multiple of 128), bf16 inputs -> wrapper tail
    # path + in-kernel masked last block, dtype-aware tile floor (16 rows).
    x2 = jax.random.normal(k3, (3, 5, 7, 11), dtype=jnp.bfloat16)
    t2 = (jax.random.uniform(k4, (3, 5, 7, 11)) > 0.5).astype(jnp.bfloat16)
    out2 = jax.block_until_ready(dice_loss(x2, t2, smooth=1.0, tile_rows=8))
    ref2 = jax.block_until_ready(dice_loss_ref(x2, t2, smooth=1.0))
    assert jnp.allclose(out2, ref2, atol=1e-4, rtol=1e-4), (out2, ref2)

    # Case 3: odd number of blocks with two splits -> exercises the unmasked
    # fast path, the masked ragged block, and the clamped fully-masked step.
    x3 = jax.random.normal(k1, (1, 2, 25, 49), dtype=jnp.float32)
    t3 = (jax.random.uniform(k2, (1, 2, 25, 49)) > 0.5).astype(jnp.float32)
    out3 = jax.block_until_ready(
        dice_loss(x3, t3, smooth=1.0, tile_rows=8, num_splits=2))
    ref3 = jax.block_until_ready(dice_loss_ref(x3, t3, smooth=1.0))
    assert jnp.allclose(out3, ref3, atol=1e-4, rtol=1e-4), (out3, ref3)

    print("KERNEL_OK")
</pallas_src>

<mosaic_0001>
module attributes {stable_mosaic.version = 11 : i64} {
  func.func @_dice_partial_kernel(%arg0: i32, %arg1: i32, %arg2: memref<16x128xf32, #tpu.memory_space<vmem>>, %arg3: memref<16x128xf32, #tpu.memory_space<vmem>>, %arg4: memref<1x2x8x128xf32, #tpu.memory_space<vmem>>) attributes {dimension_semantics = [#tpu.dimension_semantics<parallel>, #tpu.dimension_semantics<arbitrary>], iteration_bounds = array<i64: 1, 1>, scalar_prefetch = 0 : i64, scratch_operands = 0 : i64, tpu.core_type = #tpu.core_type<tc>, window_params = [{transform_indices = @transform_0, window_bounds = array<i64: 16, 128>}, {transform_indices = @transform_1, window_bounds = array<i64: 16, 128>}, {transform_indices = @transform_2, window_bounds = array<i64: 1, 2, 8, 128>}]} {
    %c0_i32 = arith.constant 0 : i32
    %0 = arith.cmpi eq, %arg1, %c0_i32 : i32
    %1 = arith.extui %0 : i1 to i32
    %c0_i32_0 = arith.constant 0 : i32
    %2 = arith.cmpi ne, %1, %c0_i32_0 : i32
    scf.if %2 {
      %cst_22 = arith.constant 0.000000e+00 : f32
      %29 = vector.broadcast %cst_22 : f32 to vector<1x2x8x128xf32>
      %c0_23 = arith.constant 0 : index
      %c0_24 = arith.constant 0 : index
      %c0_25 = arith.constant 0 : index
      %c0_26 = arith.constant 0 : index
      %30 = vector.load %arg4[%c0_23, %c0_24, %c0_25, %c0_26] : memref<1x2x8x128xf32, #tpu.memory_space<vmem>>, vector<1x2x8x128xf32>
      tpu.vector_store %arg4[%c0_23, %c0_24, %c0_25, %c0_26], %29 {strides = array<i32>} : memref<1x2x8x128xf32, #tpu.memory_space<vmem>>, vector<1x2x8x128xf32>,
    } else {
    }
    %c0 = arith.constant 0 : index
    %c0_1 = arith.constant 0 : index
    %3 = vector.load %arg2[%c0, %c0_1] : memref<16x128xf32, #tpu.memory_space<vmem>>, vector<16x128xf32>
    %c0_2 = arith.constant 0 : index
    %c0_3 = arith.constant 0 : index
    %4 = vector.load %arg3[%c0_2, %c0_3] : memref<16x128xf32, #tpu.memory_space<vmem>>, vector<16x128xf32>
    %cst = arith.constant 0.000000e+00 : f32
    %5 = vector.broadcast %cst : f32 to vector<16x128xf32>
    %6 = arith.subf %5, %3 : vector<16x128xf32>
    %7 = math.exp %6 : vector<16x128xf32>
    %cst_4 = arith.constant 1.000000e+00 : f32
    %8 = vector.broadcast %cst_4 : f32 to vector<16x128xf32>
    %9 = arith.addf %8, %7 : vector<16x128xf32>
    %10 = tpu.reciprocal %9 : vector<16x128xf32> -> vector<16x128xf32>
    %11 = arith.mulf %10, %4 : vector<16x128xf32>
    %12 = arith.addf %10, %4 : vector<16x128xf32>
    %c0_5 = arith.constant 0 : index
    %c0_6 = arith.constant 0 : index
    %c0_7 = arith.constant 0 : index
    %c0_8 = arith.constant 0 : index
    %13 = vector.load %arg4[%c0_5, %c0_6, %c0_7, %c0_8] : memref<1x2x8x128xf32, #tpu.memory_space<vmem>>, vector<1x1x8x128xf32>
    %14 = vector.shape_cast %13 : vector<1x1x8x128xf32> to vector<8x128xf32>
    %15 = vector.shape_cast %11 : vector<16x128xf32> to vector<2x8x128xf32>
    %cst_9 = arith.constant dense<0.000000e+00> : vector<8x128xf32>
    %16 = vector.multi_reduction <add>, %15, %cst_9 [0] : vector<2x8x128xf32> to vector<8x128xf32>
    %17 = arith.addf %14, %16 : vector<8x128xf32>
    %c0_10 = arith.constant 0 : index
    %c0_11 = arith.constant 0 : index
    %c0_12 = arith.constant 0 : index
    %c0_13 = arith.constant 0 : index
    %18 = vector.load %arg4[%c0_10, %c0_11, %c0_12, %c0_13] : memref<1x2x8x128xf32, #tpu.memory_space<vmem>>, vector<1x1x8x128xf32>
    %19 = vector.shape_cast %18 : vector<1x1x8x128xf32> to vector<8x128xf32>
    %20 = vector.shape_cast %17 : vector<8x128xf32> to vector<1x1x8x128xf32>
    tpu.vector_store %arg4[%c0_10, %c0_11, %c0_12, %c0_13], %20 {strides = array<i32>} : memref<1x2x8x128xf32, #tpu.memory_space<vmem>>, vector<1x1x8x128xf32>,
    %c0_14 = arith.constant 0 : index
    %c1 = arith.constant 1 : index
    %c0_15 = arith.constant 0 : index
    %c0_16 = arith.constant 0 : index
    %21 = vector.load %arg4[%c0_14, %c1, %c0_15, %c0_16] : memref<1x2x8x128xf32, #tpu.memory_space<vmem>>, vector<1x1x8x128xf32>
    %22 = vector.shape_cast %21 : vector<1x1x8x128xf32> to vector<8x128xf32>
    %23 = vector.shape_cast %12 : vector<16x128xf32> to vector<2x8x128xf32>
    %cst_17 = arith.constant dense<0.000000e+00> : vector<8x128xf32>
    %24 = vector.multi_reduction <add>, %23, %cst_17 [0] : vector<2x8x128xf32> to vector<8x128xf32>
    %25 = arith.addf %22, %24 : vector<8x128xf32>
    %c0_18 = arith.constant 0 : index
    %c1_19 = arith.constant 1 : index
    %c0_20 = arith.constant 0 : index
    %c0_21 = arith.constant 0 : index
    %26 = vector.load %arg4[%c0_18, %c1_19, %c0_20, %c0_21] : memref<1x2x8x128xf32, #tpu.memory_space<vmem>>, vector<1x1x8x128xf32>
    %27 = vector.shape_cast %26 : vector<1x1x8x128xf32> to vector<8x128xf32>
    %28 = vector.shape_cast %25 : vector<8x128xf32> to vector<1x1x8x128xf32>
    tpu.vector_store %arg4[%c0_18, %c1_19, %c0_20, %c0_21], %28 {strides = array<i32>} : memref<1x2x8x128xf32, #tpu.memory_space<vmem>>, vector<1x1x8x128xf32>,
    return
  }
  func.func @transform_0(%arg0: i32, %arg1: i32) -> (i32, i32) {
    %c1_i32 = arith.constant 1 : i32
    %0 = arith.muli %arg0, %c1_i32 : i32
    %1 = arith.addi %0, %arg1 : i32
    %c0_i32 = arith.constant 0 : i32
    %c0_i32_0 = arith.constant 0 : i32
    return %1, %c0_i32 : i32, i32
  }
  func.func @transform_1(%arg0: i32, %arg1: i32) -> (i32, i32) {
    %c1_i32 = arith.constant 1 : i32
    %0 = arith.muli %arg0, %c1_i32 : i32
    %1 = arith.addi %0, %arg1 : i32
    %c0_i32 = arith.constant 0 : i32
    %c0_i32_0 = arith.constant 0 : i32
    return %1, %c0_i32 : i32, i32
  }
  func.func @transform_2(%arg0: i32, %arg1: i32) -> (i32, i32, i32, i32) {
    %c0_i32 = arith.constant 0 : i32
    %c0_i32_0 = arith.constant 0 : i32
    %c0_i32_1 = arith.constant 0 : i32
    %c0_i32_2 = arith.constant 0 : i32
    return %arg0, %c0_i32, %c0_i32_0, %c0_i32_1 : i32, i32, i32, i32
  }
}

</mosaic_0001>

<bundles_post_ra>
// kernel: tpu_custom_call.1
= control target key start
LH: loop header
LB: loop body
LE: loop exit
PB: predicated region body
PF: predicated region fallthrough
CT: control target
= control target key end

     0   :  { %7 = vsyncpa [#allocation3], 0  ;;  %s265_s0 = inlined_call_operand.hbm [shape: f32[16,128], index: 0, kind: input, shape index: {}]   ;;  %s266_s1 = inlined_call_operand.hbm [shape: f32[16,128], index: 1, kind: input, shape index: {}]   ;;  %s267_s2 = inlined_call_operand.hbm [shape: f32[1,2,8,128], index: 2, kind: output, shape index: {}]  }
   0x1   :  { %8 = vsyncpa [#allocation6], 0 }
   0x2   :  { %9 = vsyncpa [#allocation4], 0  ;;  %s18_s11 = sshll.u32 %s265_s0, 4  ;;  %s227_s12 = smov [#allocation2]   ;;  %s19_s11 = int_to_ptr.hbm [resolvable:$true] %s18_s11 }
   0x3   :  { %s20_s13 = sshll.u32 %s227_s12, 4  ;;  %s35_s16 = sshll.u32 %s266_s1, 4  ;;  %s21_s13 = int_to_ptr.vmem [resolvable:$true] %s20_s13  ;;  %s36_s16 = int_to_ptr.hbm [resolvable:$true] %s35_s16 }
   0x4   :  { %s228_s17 = smov 128   ;;  %s229_s18 = smov 8  }
   0x5   :  { %26 = dma.hbm_to_vmem [thread:$0]  %s19_s11, 256, %s21_s13, [#allocation3], %s228_s17, %s228_s17, %s229_s18  }
   0x6   :  { %s230_s19 = smov [#allocation5]  }
   0x7   :  { %s37_s20 = sshll.u32 %s230_s19, 4  ;;  %s38_s20 = int_to_ptr.vmem [resolvable:$true] %s37_s20 }
   0x8   :  { %43 = dma.hbm_to_vmem [thread:$0]  %s36_s16, 256, %s38_s20, [#allocation6], %s228_s17, %s228_s17, %s229_s18  }
   0x9   :  { %221 = dma.done.wait [#allocation3], 256  }
   0xa   :  { %222 = vsyncadd [#allocation3], 4294967040 }
   0xb   :  { %223 = dma.done.wait [#allocation6], 256  }
   0xc   :  { %224 = vsyncadd [#allocation6], 4294967040  ;;  %v62_v0 = vld [vmem:[#allocation2] sm:$0xff]  ;;  %v63_v1 = vld [vmem:[#allocation2 + $0x8] sm:$0xff]  ;;  %s231_s0 = smov [#allocation7]   ;;  %s121_s23 = sshll.u32 %s267_s2, 4  ;;  %s122_s23 = int_to_ptr.hbm [resolvable:$true] %s121_s23 }
   0xd   :  { %v66_v2 = vsub.f32 0.0, %v62_v0  ;;  %v67_v3 = vsub.f32 0.0, %v63_v1  ;;  %v64_v25 = vld [vmem:[#allocation5] sm:$0xff]  ;;  %v65_v27 = vld [vmem:[#allocation5 + $0x8] sm:$0xff]  ;;  %s119_s1 = sshll.u32 %s231_s0, 4  ;;  %s120_s1 = int_to_ptr.vmem [resolvable:$true] %s119_s1 }
   0xf   :  { %v68_v4 = vmul.f32 1.442695, %v66_v2  ;;  %v70_v5 = vmul.f32 1.442695, %v67_v3 }
  0x11   :  { %141 = vpow2.f32 %v68_v4 }
  0x12   :  { %143 = vpow2.f32 %v70_v5 }
  0x17   :  { %v142_v6 = vpop.eup %141 }
  0x18   :  { %v144_v7 = vpop.eup %143  ;;  %v72_v8 = vadd.f32 1.0, %v142_v6 }
  0x19   :  { %v73_v9 = vadd.f32 1.0, %v144_v7 }
  0x1a   :  { %145 = vrcp.f32 %v72_v8  ;;  %vm79_vm0 = vweird.f32 %v72_v8  ;;  %v85_v13 = vand.u32 2147483648, %v72_v8  ;;  %v83_v16 = vand.u32 2147483647, %v72_v8 }
  0x1b   :  { %147 = vrcp.f32 %v73_v9  ;;  %v99_v17 = vand.u32 2147483648, %v73_v9  ;;  %vm93_vm2 = vweird.f32 %v73_v9  ;;  %v97_v19 = vand.u32 2147483647, %v73_v9 }
  0x1c   :  { %v86_v21 = vor.u32 1.1754944e-38, %v85_v13  ;;  %vm84_vm5 = vcmp.eq.f32.partialorder %v83_v16, 8.507059e+37 }
  0x1d   :  { %v100_v24 = vor.u32 1.1754944e-38, %v99_v17  ;;  %vm98_vm7 = vcmp.eq.f32.partialorder %v97_v19, 8.507059e+37 }
  0x20   :  { %v146_v10 = vpop.eup %145 }
  0x21   :  { %v148_v11 = vpop.eup %147  ;;  %v75_v12 = vmul.f32 %v146_v10, %v72_v8  ;;  %vm80_vm1 = vweird.f32 %v146_v10 }
  0x22   :  { %v89_v14 = vmul.f32 %v148_v11, %v73_v9  ;;  %vm94_vm3 = vweird.f32 %v148_v11  ;;  %vm81_vm4 = vmor %vm79_vm0, %vm80_vm1 }
  0x23   :  { %v76_v15 = vsub.f32 1.0, %v75_v12  ;;  %vm95_vm6 = vmor %vm93_vm2, %vm94_vm3 }
  0x24   :  { %v90_v18 = vsub.f32 1.0, %v89_v14 }
  0x25   :  { %v77_v20 = vmul.f32 %v146_v10, %v76_v15 }
  0x26   :  { %v91_v22 = vmul.f32 %v148_v11, %v90_v18 }
  0x27   :  { %v78_v23 = vadd.f32 %v146_v10, %v77_v20 }
  0x28   :  { %v92_v26 = vadd.f32 %v148_v11, %v91_v22 }
  0x29   :  { %v82_v28 = vsel %vm81_vm4, %v146_v10, %v78_v23 }
  0x2a   :  { %v87_v29 = vsel %vm84_vm5, %v86_v21, %v82_v28  ;;  %v96_v30 = vsel %vm95_vm6, %v148_v11, %v92_v26 }
  0x2b   :  { %v101_v31 = vsel %vm98_vm7, %v100_v24, %v96_v30  ;;  %v102_v32 = vmul.f32 %v87_v29, %v64_v25  ;;  %v104_v33 = vadd.f32 %v87_v29, %v64_v25 }
  0x2c   :  { %v103_v34 = vmul.f32 %v101_v31, %v65_v27  ;;  %v105_v35 = vadd.f32 %v101_v31, %v65_v27 }
  0x2e   :  { %v107_v36 = vadd.f32 %v103_v34, %v102_v32  ;;  %v112_v37 = vadd.f32 %v105_v35, %v104_v33 }
  0x30   :  { %109 = vst [vmem:[#allocation7] sm:$0xff] %v107_v36 }
  0x31   :  { %114 = vst [vmem:[#allocation7 + $0x8] sm:$0xff] %v112_v37 }
  0x32   :  { %127 = dma.vmem_to_hbm [thread:$0]  %s120_s1, 256, %s122_s23, [#allocation4], %s228_s17, %s228_s17, %s229_s18  }
  0x33   :  { %225 = dma.done.wait [#allocation4], 256  }
  0x34   :  { %226 = vsyncadd [#allocation4], 4294967040 }
  0x35   :  { %132 = vsyncpa [#allocation3], 1 }
  0x36   :  { %133 = vsyncpa [#allocation6], 1 }
  0x37   :  { %134 = vsyncpa [#allocation4], 1 }

</bundles_post_ra>
